<compile_context>
chip_gen: v6e
topology: v6e:2x2x1
jax: 0.10.0
libtpu: 0.0.40
codegen_flags: <defaults>
</compile_context>

<pallas_src>
import functools

import jax
import jax.numpy as jnp
from jax.experimental import pallas as pl
from jax.experimental.pallas import tpu as pltpu


# ---------------------------------------------------------------------------
# Kernels
# ---------------------------------------------------------------------------

def _conv_add_root_kernel(a_ref, hn_ref, hr_ref, b_ref, out_ref, acc_ref, *,
                          apply_relu):
    """GraphConv with the feature transforms pre-applied in the wrapper:

        out = relu( sum_k A[i,k] @ hn[k] + hr[i] + b )

    Used for conv1 (in_channels == 1): hn = x*W_rel and hr = x*W_root are
    precomputed (n_pad, H) bf16 arrays, so there is no 1-lane-wide accumulator
    and no degenerate K=1 MXU matmul.
    """
    k = pl.program_id(1)

    @pl.when(k == 0)
    def _():
        acc_ref[...] = jnp.zeros_like(acc_ref)

    # A is stored int8 in HBM; cast the tile to bf16 right before the MXU dot.
    acc_ref[...] += jnp.dot(a_ref[...].astype(jnp.bfloat16), hn_ref[...],
                            preferred_element_type=jnp.float32)

    @pl.when(k == pl.num_programs(1) - 1)
    def _():
        out = acc_ref[...] + hr_ref[...].astype(jnp.float32) + b_ref[...]
        if apply_relu:
            out = jnp.maximum(out, 0.0)
        out_ref[...] = out.astype(out_ref.dtype)


def _conv_kernel(a_ref, hn_ref, hr_ref, wr_ref, wt_ref, b_ref, out_ref,
                 acc_ref, *, apply_relu):
    """GraphConv(H -> H):

        agg = sum_k A[i,k] @ h[k]         (int8 load -> bf16 MXU, f32 acc)
        out = agg @ Wr + h_root @ Wt + b  (two bf16 MXU dots, no concat copy)
    """
    k = pl.program_id(1)

    @pl.when(k == 0)
    def _():
        acc_ref[...] = jnp.zeros_like(acc_ref)

    acc_ref[...] += jnp.dot(a_ref[...].astype(jnp.bfloat16), hn_ref[...],
                            preferred_element_type=jnp.float32)

    @pl.when(k == pl.num_programs(1) - 1)
    def _():
        out = (jnp.dot(acc_ref[...].astype(jnp.bfloat16), wr_ref[...],
                       preferred_element_type=jnp.float32)
               + jnp.dot(hr_ref[...], wt_ref[...],
                         preferred_element_type=jnp.float32)
               + b_ref[...])
        if apply_relu:
            out = jnp.maximum(out, 0.0)
        out_ref[...] = out.astype(out_ref.dtype)


def _pool_linear_kernel(p_ref, h_ref, wl_ref, bl_ref, out_ref, pool_acc):
    """global_mean_pool (P @ h reduced over node tiles) + dropout(eval) + Linear.

    The Linear runs against a 128-lane padded weight/bias so the final store is
    lane-dense; the wrapper slices the real 4 output columns.
    """
    k = pl.program_id(0)

    @pl.when(k == 0)
    def _():
        pool_acc[...] = jnp.zeros_like(pool_acc)

    pool_acc[...] += jnp.dot(p_ref[...], h_ref[...].astype(jnp.float32),
                             preferred_element_type=jnp.float32)

    @pl.when(k == pl.num_programs(0) - 1)
    def _():
        # dropout (eval mode) == identity
        out_ref[...] = (jnp.dot(pool_acc[...], wl_ref[...],
                                preferred_element_type=jnp.float32)
                        + bl_ref[...])


# ---------------------------------------------------------------------------
# Wrapper
# ---------------------------------------------------------------------------

def _round_up(n, m):
    return ((n + m - 1) // m) * m


def _pick_tiles(n):
    """Return (n_pad, tm, tk).

    * pad to a 128-row quantum (A bytes scale with n_pad^2)
    * tk: largest of {2048,1024,512,256,128} dividing n_pad (big reduction
      tiles amortize the ~0.35us per-grid-step overhead; VMEM is cheap)
    * tm: <= 512 and chosen so there are >= 2 row tiles whenever possible so
      the "parallel" axis actually lands work on both v7x TensorCores.
    """
    n_pad = _round_up(max(n, 1), 128)
    tk = max(c for c in (2048, 1024, 512, 256, 128) if n_pad % c == 0)
    tm = n_pad
    for c in (512, 256, 128, 64):
        if n_pad % c == 0 and n_pad // c >= 2:
            tm = c
            break
    return n_pad, tm, tk


def grcn_forward(x, edge_index, batch, params, num_graphs):
    """x: (N,) node scalar features; edge_index: (2, E) int32; batch: (N,) int32."""
    x = x.reshape(-1, 1).astype(jnp.float32)
    n = x.shape[0]
    n_pad, tm, tk = _pick_tiles(n)
    gr, gk = n_pad // tm, n_pad // tk

    (wr1, br1, wt1, wr2, br2, wt2, wr3, br3, wt3, wl, bl) = params
    H = wr1.shape[1]

    # ---- adjacency A[dst, src] = edge multiplicity, built directly in int8 ---
    # (exact for multiplicities <= 127; no f32 N_pad^2 HBM round-trip)
    src, dst = edge_index[0], edge_index[1]
    A = (jnp.zeros((n_pad, n_pad), jnp.int8)
         .at[dst, src].add(jnp.ones_like(dst, dtype=jnp.int8)))

    # ---- conv1 feature transforms pre-applied (in_channels == 1) -------------
    x_pad = jnp.zeros((n_pad, 1), jnp.float32).at[:n, :].set(x)
    h0_nbr = (x_pad * wr1).astype(jnp.bfloat16)    # x @ W_rel   -> (n_pad, H)
    h0_root = (x_pad * wt1).astype(jnp.bfloat16)   # x @ W_root  -> (n_pad, H)

    # ---- mean-pool matrix P (num_graphs, n_pad); f32 keeps 1/count exact -----
    onehot = (batch[None, :] == jnp.arange(num_graphs)[:, None]).astype(jnp.float32)
    counts = jnp.maximum(onehot.sum(axis=1, keepdims=True), 1.0)
    P = jnp.zeros((num_graphs, n_pad), jnp.float32).at[:, :n].set(onehot / counts)

    # ---- weights: bf16 for MXU dots, f32 biases; lane-padded final Linear ----
    wr2b, wt2b = wr2.astype(jnp.bfloat16), wt2.astype(jnp.bfloat16)
    wr3b, wt3b = wr3.astype(jnp.bfloat16), wt3.astype(jnp.bfloat16)
    out_lanes = 128
    n_out = wl.shape[1]
    wl_p = jnp.zeros((H, out_lanes), jnp.float32).at[:, :n_out].set(wl)
    bl_p = jnp.zeros((1, out_lanes), jnp.float32).at[:, :n_out].set(bl)

    # ---- VMEM budget (double-buffered tiles); never below compiler default ---
    conv_vmem = (2 * tm * tk                       # A tile (int8), double-buffered
                 + 2 * tk * H * 2                  # neighbor activations (bf16)
                 + 2 * tm * H * 2                  # root activations (bf16)
                 + 2 * tm * H * 2                  # output tile (bf16)
                 + 2 * (2 * H * H * 2 + H * 4)     # weights (bf16) + bias (f32)
                 + tm * H * 4                      # f32 accumulator
                 + (2 << 20))                      # headroom
    vmem_limit = int(min(64 << 20, max(32 << 20, 2 * conv_vmem)))
    conv_cp = pltpu.CompilerParams(
        dimension_semantics=("parallel", "arbitrary"),   # rows across TCs on v7x
        vmem_limit_bytes=vmem_limit)
    pool_cp = pltpu.CompilerParams(
        dimension_semantics=("arbitrary",),
        vmem_limit_bytes=vmem_limit)

    a_spec = pl.BlockSpec((tm, tk), lambda i, k: (i, k))
    nbr_spec = pl.BlockSpec((tk, H), lambda i, k: (k, 0))
    root_spec = pl.BlockSpec((tm, H), lambda i, k: (i, 0))
    w_spec = pl.BlockSpec((H, H), lambda i, k: (0, 0))
    row_vec = pl.BlockSpec((1, H), lambda i, k: (0, 0))
    out_spec = pl.BlockSpec((tm, H), lambda i, k: (i, 0))

    # ---- conv1: GraphConv(1 -> H) + ReLU --------------------------------------
    h1 = pl.pallas_call(
        functools.partial(_conv_add_root_kernel, apply_relu=True),
        out_shape=jax.ShapeDtypeStruct((n_pad, H), jnp.bfloat16),
        grid=(gr, gk),
        in_specs=[a_spec, nbr_spec, root_spec, row_vec],
        out_specs=out_spec,
        scratch_shapes=[pltpu.VMEM((tm, H), jnp.float32)],
        compiler_params=conv_cp,
    )(A, h0_nbr, h0_root, br1)

    # ---- conv2 / conv3: GraphConv(H -> H) -------------------------------------
    def conv_layer(h_in, wr, wt, b, apply_relu):
        return pl.pallas_call(
            functools.partial(_conv_kernel, apply_relu=apply_relu),
            out_shape=jax.ShapeDtypeStruct((n_pad, H), jnp.bfloat16),
            grid=(gr, gk),
            in_specs=[a_spec, nbr_spec, root_spec, w_spec, w_spec, row_vec],
            out_specs=out_spec,
            scratch_shapes=[pltpu.VMEM((tm, H), jnp.float32)],
            compiler_params=conv_cp,
        )(A, h_in, h_in, wr, wt, b)

    h2 = conv_layer(h1, wr2b, wt2b, br2, apply_relu=True)
    h3 = conv_layer(h2, wr3b, wt3b, br3, apply_relu=False)

    # ---- global_mean_pool + dropout(eval) + Linear -----------------------------
    out_padded = pl.pallas_call(
        _pool_linear_kernel,
        out_shape=jax.ShapeDtypeStruct((num_graphs, out_lanes), jnp.float32),
        grid=(gk,),
        in_specs=[pl.BlockSpec((num_graphs, tk), lambda k: (0, k)),
                  pl.BlockSpec((tk, H), lambda k: (k, 0)),
                  pl.BlockSpec((H, out_lanes), lambda k: (0, 0)),
                  pl.BlockSpec((1, out_lanes), lambda k: (0, 0))],
        out_specs=pl.BlockSpec((num_graphs, out_lanes), lambda k: (0, 0)),
        scratch_shapes=[pltpu.VMEM((num_graphs, H), jnp.float32)],
        compiler_params=pool_cp,
    )(P, h3, wl_p, bl_p)

    return out_padded[:, :n_out]


def init_params(hidden_channels, key):
    """Deterministic parameter init (shapes follow GraphConv / Linear, (in,out))."""
    ks = jax.random.split(key, 11)

    def unif(k, shape, fan_in):
        bound = 1.0 / jnp.sqrt(jnp.float32(fan_in))
        return jax.random.uniform(k, shape, jnp.float32, -bound, bound)

    H = hidden_channels
    wr1 = unif(ks[0], (1, H), 1)    # conv1 lin_rel (bias below), lin_root no bias
    br1 = unif(ks[1], (1, H), 1)
    wt1 = unif(ks[2], (1, H), 1)
    wr2 = unif(ks[3], (H, H), H)
    br2 = unif(ks[4], (1, H), H)
    wt2 = unif(ks[5], (H, H), H)
    wr3 = unif(ks[6], (H, H), H)
    br3 = unif(ks[7], (1, H), H)
    wt3 = unif(ks[8], (H, H), H)
    wl = unif(ks[9], (H, 4), H)     # final Linear H -> 4
    bl = unif(ks[10], (1, 4), H)
    return (wr1, br1, wt1, wr2, br2, wt2, wr3, br3, wt3, wl, bl)


if __name__ == "__main__":
    key = jax.random.PRNGKey(0)
    k_x, k_p = jax.random.split(key)

    hidden_channels = 32
    num_nodes = 16
    num_graphs = 2

    # node scalar features (forward does x.reshape(-1, 1))
    x = jax.random.normal(k_x, (num_nodes,), jnp.float32)

    # two graphs of 8 nodes each; ring edges within each graph (both directions)
    edges = []
    for g in range(num_graphs):
        base = g * 8
        for i in range(8):
            a, b = base + i, base + (i + 1) % 8
            edges.append((a, b))
            edges.append((b, a))
    edge_index = jnp.array(edges, dtype=jnp.int32).T                # (2, E)
    batch = jnp.repeat(jnp.arange(num_graphs, dtype=jnp.int32), 8)  # (N,)

    params = init_params(hidden_channels, k_p)

    out = grcn_forward(x, edge_index, batch, params, num_graphs)
    out = jax.block_until_ready(out)
    assert out.shape == (num_graphs, 4) and out.dtype == jnp.float32
    print("KERNEL_OK")
</pallas_src>

<mosaic_0001>
module attributes {stable_mosaic.version = 11 : i64} {
  func.func @_conv_add_root_kernel(%arg0: i32, %arg1: i32, %arg2: memref<64x128xi8, #tpu.memory_space<vmem>>, %arg3: memref<128x32xbf16, #tpu.memory_space<vmem>>, %arg4: memref<64x32xbf16, #tpu.memory_space<vmem>>, %arg5: memref<1x32xf32, #tpu.memory_space<vmem>>, %arg6: memref<64x32xbf16, #tpu.memory_space<vmem>>, %arg7: memref<64x32xf32, #tpu.memory_space<vmem>>) attributes {dimension_semantics = [#tpu.dimension_semantics<parallel>, #tpu.dimension_semantics<arbitrary>], iteration_bounds = array<i64: 2, 1>, scalar_prefetch = 0 : i64, scratch_operands = 1 : i64, tpu.core_type = #tpu.core_type<tc>, window_params = [{transform_indices = @transform_0, window_bounds = array<i64: 64, 128>}, {transform_indices = @transform_1, window_bounds = array<i64: 128, 32>}, {transform_indices = @transform_2, window_bounds = array<i64: 64, 32>}, {pipeline_mode = #tpu.pipeline_mode<synchronous>, transform_indices = @transform_3, window_bounds = array<i64: 1, 32>}, {transform_indices = @transform_4, window_bounds = array<i64: 64, 32>}]} {
    %c0_i32 = arith.constant 0 : i32
    %0 = arith.cmpi eq, %arg1, %c0_i32 : i32
    %1 = arith.extui %0 : i1 to i32
    %c0_i32_0 = arith.constant 0 : i32
    %2 = arith.cmpi ne, %1, %c0_i32_0 : i32
    scf.if %2 {
      %cst_10 = arith.constant 0.000000e+00 : f32
      %13 = vector.broadcast %cst_10 : f32 to vector<64x32xf32>
      %c0_11 = arith.constant 0 : index
      %c0_12 = arith.constant 0 : index
      %14 = vector.load %arg7[%c0_11, %c0_12] : memref<64x32xf32, #tpu.memory_space<vmem>>, vector<64x32xf32>
      tpu.vector_store %arg7[%c0_11, %c0_12], %13 {strides = array<i32>} : memref<64x32xf32, #tpu.memory_space<vmem>>, vector<64x32xf32>,
    } else {
    }
    %c0 = arith.constant 0 : index
    %c0_1 = arith.constant 0 : index
    %3 = vector.load %arg7[%c0, %c0_1] : memref<64x32xf32, #tpu.memory_space<vmem>>, vector<64x32xf32>
    %c0_2 = arith.constant 0 : index
    %c0_3 = arith.constant 0 : index
    %4 = vector.load %arg2[%c0_2, %c0_3] : memref<64x128xi8, #tpu.memory_space<vmem>>, vector<64x128xi8>
    %5 = arith.sitofp %4 : vector<64x128xi8> to vector<64x128xbf16>
    %c0_4 = arith.constant 0 : index
    %c0_5 = arith.constant 0 : index
    %6 = vector.load %arg3[%c0_4, %c0_5] : memref<128x32xbf16, #tpu.memory_space<vmem>>, vector<128x32xbf16>
    %cst = arith.constant dense<0.000000e+00> : vector<64x32xf32>
    %7 = tpu.matmul %5, %6, %cst {dimension_numbers = #tpu.dot_dimension_numbers<[1], [0], [0], [1], [0, 0, 1, 1], [], []>} : vector<64x128xbf16>, vector<128x32xbf16>, vector<64x32xf32> -> vector<64x32xf32>
    %8 = arith.addf %3, %7 : vector<64x32xf32>
    %c0_6 = arith.constant 0 : index
    %c0_7 = arith.constant 0 : index
    %9 = vector.load %arg7[%c0_6, %c0_7] : memref<64x32xf32, #tpu.memory_space<vmem>>, vector<64x32xf32>
    tpu.vector_store %arg7[%c0_6, %c0_7], %8 {strides = array<i32>} : memref<64x32xf32, #tpu.memory_space<vmem>>, vector<64x32xf32>,
    %c0_i32_8 = arith.constant 0 : i32
    %10 = arith.cmpi eq, %arg1, %c0_i32_8 : i32
    %11 = arith.extui %10 : i1 to i32
    %c0_i32_9 = arith.constant 0 : i32
    %12 = arith.cmpi ne, %11, %c0_i32_9 : i32
    scf.if %12 {
      %c0_10 = arith.constant 0 : index
      %c0_11 = arith.constant 0 : index
      %13 = vector.load %arg7[%c0_10, %c0_11] : memref<64x32xf32, #tpu.memory_space<vmem>>, vector<64x32xf32>
      %c0_12 = arith.constant 0 : index
      %c0_13 = arith.constant 0 : index
      %14 = vector.load %arg4[%c0_12, %c0_13] : memref<64x32xbf16, #tpu.memory_space<vmem>>, vector<64x32xbf16>
      %15 = arith.extf %14 : vector<64x32xbf16> to vector<64x32xf32>
      %16 = arith.addf %13, %15 : vector<64x32xf32>
      %c0_14 = arith.constant 0 : index
      %c0_15 = arith.constant 0 : index
      %17 = vector.load %arg5[%c0_14, %c0_15] : memref<1x32xf32, #tpu.memory_space<vmem>>, vector<1x32xf32>
      %18 = vector.broadcast %17 : vector<1x32xf32> to vector<64x32xf32>
      %19 = arith.addf %16, %18 : vector<64x32xf32>
      %cst_16 = arith.constant 0.000000e+00 : f32
      %20 = vector.broadcast %cst_16 : f32 to vector<64x32xf32>
      %21 = arith.maximumf %19, %20 : vector<64x32xf32>
      %22 = arith.truncf %21 : vector<64x32xf32> to vector<64x32xbf16>
      %c0_17 = arith.constant 0 : index
      %c0_18 = arith.constant 0 : index
      %23 = vector.load %arg6[%c0_17, %c0_18] : memref<64x32xbf16, #tpu.memory_space<vmem>>, vector<64x32xbf16>
      tpu.vector_store %arg6[%c0_17, %c0_18], %22 {strides = array<i32>} : memref<64x32xbf16, #tpu.memory_space<vmem>>, vector<64x32xbf16>,
    } else {
    }
    return
  }
  func.func @transform_0(%arg0: i32, %arg1: i32) -> (i32, i32) {
    %c0_i32 = arith.constant 0 : i32
    return %arg0, %arg1 : i32, i32
  }
  func.func @transform_1(%arg0: i32, %arg1: i32) -> (i32, i32) {
    %c0_i32 = arith.constant 0 : i32
    %c0_i32_0 = arith.constant 0 : i32
    return %arg1, %c0_i32 : i32, i32
  }
  func.func @transform_2(%arg0: i32, %arg1: i32) -> (i32, i32) {
    %c0_i32 = arith.constant 0 : i32
    %c0_i32_0 = arith.constant 0 : i32
    return %arg0, %c0_i32 : i32, i32
  }
  func.func @transform_3(%arg0: i32, %arg1: i32) -> (i32, i32) {
    %c0_i32 = arith.constant 0 : i32
    %c0_i32_0 = arith.constant 0 : i32
    %c0_i32_1 = arith.constant 0 : i32
    return %c0_i32, %c0_i32_0 : i32, i32
  }
  func.func @transform_4(%arg0: i32, %arg1: i32) -> (i32, i32) {
    %c0_i32 = arith.constant 0 : i32
    %c0_i32_0 = arith.constant 0 : i32
    return %arg0, %c0_i32 : i32, i32
  }
}

</mosaic_0001>

<bundles_post_ra>
// kernel: tpu_custom_call.1
= control target key start
LH: loop header
LB: loop body
LE: loop exit
PB: predicated region body
PF: predicated region fallthrough
CT: control target
= control target key end

     0   :  { %s829_s15 = smov 0   ;;  %s831_s16 = smov 0   ;;  %s937_s0 = inlined_call_operand.vmem [shape: s8[128,128], index: 0, kind: input, shape index: {}]   ;;  %s938_s1 = inlined_call_operand.vmem [shape: bf16[128,32], index: 1, kind: input, shape index: {}]   ;;  %s939_s2 = inlined_call_operand.vmem [shape: bf16[128,32], index: 2, kind: input, shape index: {}]   ;;  %s940_s3 = inlined_call_operand.vmem [shape: f32[1,32], index: 3, kind: input, shape index: {}]   ;;  %s941_s4 = inlined_call_operand.vmem [shape: bf16[128,32], index: 4, kind: output, shape index: {}]  }
   0x1   :  { %s833_s17 = smov 0  }
   0x2 LB: > { %s26_s18 = sadd.s32 1, %s797_s16  ;;  %p641_p0 = scmp.ge.s32.totalorder %s801_s17, 1  ;;  %s801_s17 = sphi %s833_s17, %s14_s17   ;;  %s797_s16 = sphi %s831_s16, %s943_s16   ;;  %s793_s15 = sphi %s829_s15, %s942_s15  }
   0x3   : > { %p28_p1 = scmp.ge.s32.totalorder %s26_s18, 2  ;;  %p202_p2 = scmp.lt.s32.totalorder %s801_s17, 3 }
   0x5   : > { %s945_s18 = smov (%p28_p1, %s26_s18), 0  ;;  %p203_p3 = pnand %p641_p0, %p202_p2 }
   0x6   : > { %s642_s21 = sshll.u32 (!%p203_p3), %s793_s15, 1  ;;  %s644_s14 = sshll.u32 (!%p203_p3), %s793_s15, 3 }
   0x7   : > { %206 = sbr.rel (%p203_p3) target bundleno = 264 (0x108), region = 36  ;;  %p242_p4 = scmp.lt.s32.totalorder (!%p203_p3), %s642_s21, 3 }
   0x8   : > { %p257_p5 = scmp.lt.s32.totalorder (!%p203_p3), %s644_s14, 15 }
   0xc   : > { %v771_v0 = vld [vmem:[%s938_s1 + $0x38] sm:$0xff]   ;;  %v772_v1 = vld [vmem:[%s938_s1 + $0x30] sm:$0xff]   ;;  %s947_s21 = smov (!%p242_p4, %s642_s21), 3  ;;  %v773_v2 = vld [vmem:[%s938_s1 + $0x28] sm:$0xff]   ;;  %vm273_vm0 = vcmask 261120   ;;  %v803_v8 = vmov 0.0  }
   0xd   : > { %706 = vmatprep.subr.bf16.mxu0 %v771_v0  ;;  %730 = vmatprep.subr.bf16.mxu1 %v771_v0  ;;  %s643_s26 = sshll.u32 %s947_s21, 3  ;;  %v774_v3 = vld [vmem:[%s938_s1 + $0x20] sm:$0xff]   ;;  %276 = vst.msk [vmem:[#allocation2 + $0x10] sm:$0xff] %vm273_vm0, %v803_v8  ;;  %274 = vst.msk [vmem:[#allocation2] sm:$0xff] %vm273_vm0, %v803_v8  ;;  %v775_v9 = vld [vmem:[%s938_s1 + $0x18] sm:$0xff]   ;;  %s949_s14 = smov (!%p257_p5, %s644_s14), 15 }
   0xe   : > { %707 = vmatpush3.bf16.msra.mxu0 %v771_v0  ;;  %738 = vmatpush3.bf16.msra.mxu1 %v771_v0  ;;  %s248_s29 = scalar_lea.vmem %s937_s0, %s643_s26  ;;  %275 = vst.msk [vmem:[#allocation2 + $0x8] sm:$0xff] %vm273_vm0, %v803_v8  ;;  %277 = vst.msk [vmem:[#allocation2 + $0x18] sm:$0xff] %vm273_vm0, %v803_v8  ;;  %v776_v10 = vld [vmem:[%s938_s1 + $0x10] sm:$0xff]   ;;  %v777_v11 = vld [vmem:[%s938_s1 + $0x8] sm:$0xff]   ;;  %s645_s19 = sshll.u32 %s949_s14, 2  ;;  %vm532_vm1 = vcmask 257024  }
   0xf   : > { %708 = vmatprep.subr.bf16.mxu0 %v772_v1  ;;  %731 = vmatprep.subr.bf16.mxu1 %v772_v1  ;;  %v290_v4 = vld [vmem:[%s248_s29] sm:$0xff]  ;;  %v291_v5 = vld [vmem:[%s248_s29 + $0x8] sm:$0xff]  ;;  %278 = vst.msk [vmem:[#allocation2 + $0x20] sm:$0xff] %vm273_vm0, %v803_v8  ;;  %279 = vst.msk [vmem:[#allocation2 + $0x28] sm:$0xff] %vm273_vm0, %v803_v8  ;;  %s260_s22 = scalar_lea.vmem %s939_s2, %s645_s19  ;;  %s910_s26 = scalar_lea.vmem %s941_s4, %s645_s19 }
  0x10   : > { %v292_v6 = vunpack.c.l.s8.bf16 %v290_v4  ;;  %v294_v7 = vunpack.c.l.s8.bf16 %v291_v5  ;;  %280 = vst.msk [vmem:[#allocation2 + $0x30] sm:$0xff] %vm273_vm0, %v803_v8  ;;  %281 = vst.msk [vmem:[#allocation2 + $0x38] sm:$0xff] %vm273_vm0, %v803_v8  ;;  %v778_v12 = vld [vmem:[%s938_s1] sm:$0xff]   ;;  %v293_v13 = vunpack.c.h.s8.bf16 %v290_v4  ;;  %v295_v14 = vunpack.c.h.s8.bf16 %v291_v5  ;;  %v691_v30 = vld [vmem:[%s260_s22 + $0x8] sm:$0xff]  }
  0x11   : > { %v693_v31 = vld [vmem:[%s260_s22 + $0x18] sm:$0xff]   ;;  %v676_v37 = vld [vmem:[%s260_s22] sm:$0xff]   ;;  %v692_v38 = vld [vmem:[%s260_s22 + $0x10] sm:$0xff]   ;;  %v681_v41 = vunpack.c.l.bf16 %v691_v30  ;;  %v682_v54 = vunpack.c.h.bf16 %v691_v30 }
  0x12   : > { %709 = vmatpush3.bf16.msra.mxu0 %v772_v1  ;;  %739 = vmatpush3.bf16.msra.mxu1 %v772_v1  ;;  %v689_v42 = vunpack.c.l.bf16 %v693_v31  ;;  %v677_v45 = vunpack.c.l.bf16 %v676_v37  ;;  %v685_v46 = vunpack.c.l.bf16 %v692_v38  ;;  %v656_v48 = vld [vmem:[%s940_s3] ss:$0 sm:$0xff]  ;;  %v690_v55 = vunpack.c.h.bf16 %v693_v31 }
  0x13   : > { %710 = vmatprep.subr.bf16.mxu0 %v773_v2  ;;  %732 = vmatprep.subr.bf16.mxu1 %v773_v2  ;;  %v678_v62 = vunpack.c.h.bf16 %v676_v37  ;;  %v686_v63 = vunpack.c.h.bf16 %v692_v38 }
  0x14   : > { %722 = vmatprep.mubr.bf16.mxu0 %v292_v6  ;;  %726 = vmatprep.mubr.bf16.mxu1 %v294_v7  ;;  %v284_v15 = vld [vmem:[#allocation2 + $0x10] sm:$0xff]  ;;  %v282_v19 = vld [vmem:[#allocation2] sm:$0xff] }
  0x15   : > { %v285_v25 = vld [vmem:[#allocation2 + $0x18] sm:$0xff]  ;;  %v283_v29 = vld [vmem:[#allocation2 + $0x8] sm:$0xff] }
  0x16   : > { %711 = vmatpush3.bf16.msra.mxu0 %v773_v2  ;;  %740 = vmatpush3.bf16.msra.mxu1 %v773_v2  ;;  %v286_v20 = vld [vmem:[#allocation2 + $0x20] sm:$0xff]  ;;  %v287_v34 = vld [vmem:[#allocation2 + $0x28] sm:$0xff] }
  0x17   : > { %712 = vmatprep.subr.bf16.mxu0 %v774_v3  ;;  %733 = vmatprep.subr.bf16.mxu1 %v774_v3  ;;  %v288_v16 = vld [vmem:[#allocation2 + $0x30] sm:$0xff]  ;;  %v289_v26 = vld [vmem:[#allocation2 + $0x38] sm:$0xff] }
  0x1a   : > { %713 = vmatpush3.bf16.msra.mxu0 %v774_v3  ;;  %741 = vmatpush3.bf16.msra.mxu1 %v774_v3 }
  0x1b   : > { %714 = vmatprep.subr.bf16.mxu0 %v775_v9  ;;  %734 = vmatprep.subr.bf16.mxu1 %v775_v9 }
  0x1e   : > { %715 = vmatpush3.bf16.msra.mxu0 %v775_v9  ;;  %742 = vmatpush3.bf16.msra.mxu1 %v775_v9 }
  0x1f   : > { %716 = vmatprep.subr.bf16.mxu0 %v776_v10  ;;  %735 = vmatprep.subr.bf16.mxu1 %v776_v10 }
  0x22   : > { %717 = vmatpush3.bf16.msra.mxu0 %v776_v10  ;;  %743 = vmatpush3.bf16.msra.mxu1 %v776_v10 }
  0x23   : > { %718 = vmatprep.subr.bf16.mxu0 %v777_v11  ;;  %736 = vmatprep.subr.bf16.mxu1 %v777_v11 }
  0x26   : > { %719 = vmatpush3.bf16.msra.mxu0 %v777_v11  ;;  %744 = vmatpush3.bf16.msra.mxu1 %v777_v11 }
  0x27   : > { %720 = vmatprep.subr.bf16.mxu0 %v778_v12  ;;  %737 = vmatprep.subr.bf16.mxu1 %v778_v12 }
  0x2a   : > { %721 = vmatpush3.bf16.msra.mxu0 %v778_v12  ;;  %745 = vmatpush3.bf16.msra.mxu1 %v778_v12 }
  0x2d   : > { %723 = vmatmul.mubr.bf16.vlgmr.msra.gmra.mxu0 %v293_v13  ;;  %727 = vmatmul.mubr.bf16.vlgmr.msra.gmra.mxu1 %v295_v14 }
  0xed   : > { %v724_v17 = vpop.f32.mrf.mxu0  ;;  %v728_v18 = vpop.f32.mrf.mxu1 }
  0xee   : > { %v427_v21 = vadd.f32 %v724_v17, %v284_v15  ;;  %v431_v22 = vadd.f32 %v728_v18, %v288_v16 }
  0xef   : > { %v394_v23 = vpop.f32.mrf.mxu0  ;;  %v410_v24 = vpop.f32.mrf.mxu1 }
  0xf0   : > { %436 = vst.msk [vmem:[#allocation2 + $0x10] sm:$0xff] %vm273_vm0, %v427_v21  ;;  %440 = vst.msk [vmem:[#allocation2 + $0x30] sm:$0xff] %vm273_vm0, %v431_v22  ;;  %v425_v27 = vadd.f32 %v394_v23, %v282_v19  ;;  %v429_v28 = vadd.f32 %v410_v24, %v286_v20 }
  0xf1   : > { %v725_v32 = vpop.f32.mrf.mxu0  ;;  %v729_v33 = vpop.f32.mrf.mxu1 }
  0xf2   : > { %434 = vst.msk [vmem:[#allocation2] sm:$0xff] %vm273_vm0, %v425_v27  ;;  %438 = vst.msk [vmem:[#allocation2 + $0x20] sm:$0xff] %vm273_vm0, %v429_v28  ;;  %v428_v35 = vadd.f32 %v725_v32, %v285_v25  ;;  %v432_v36 = vadd.f32 %v729_v33, %v289_v26 }
  0xf3   : > { %v397_v39 = vpop.f32.mrf.mxu0  ;;  %v413_v40 = vpop.f32.mrf.mxu1 }
  0xf4   : > { %437 = vst.msk [vmem:[#allocation2 + $0x18] sm:$0xff] %vm273_vm0, %v428_v35  ;;  %441 = vst.msk [vmem:[#allocation2 + $0x38] sm:$0xff] %vm273_vm0, %v432_v36  ;;  %v426_v43 = vadd.f32 %v397_v39, %v283_v29  ;;  %v430_v44 = vadd.f32 %v413_v40, %v287_v34 }
  0xf6   : > { %435 = vst.msk [vmem:[#allocation2 + $0x8] sm:$0xff] %vm273_vm0, %v426_v43  ;;  %439 = vst.msk [vmem:[#allocation2 + $0x28] sm:$0xff] %vm273_vm0, %v430_v44 }
  0xf7   : > { %v447_v47 = vld [vmem:[#allocation2 + $0x10] sm:$0xff] }
  0xf8   : > { %v451_v49 = vld [vmem:[#allocation2 + $0x30] sm:$0xff]  ;;  %v471_v50 = vadd.f32 %v681_v41, %v447_v47 }
  0xf9   : > { %v475_v51 = vadd.f32 %v689_v42, %v451_v49  ;;  %v445_v52 = vld [vmem:[#allocation2] sm:$0xff] }
  0xfa   : > { %v449_v53 = vld [vmem:[#allocation2 + $0x20] sm:$0xff]  ;;  %v486_v56 = vadd.f32 %v656_v48, %v471_v50  ;;  %v469_v58 = vadd.f32 %v677_v45, %v445_v52 }
  0xfb   : > { %v490_v57 = vadd.f32 %v656_v48, %v475_v51  ;;  %v473_v59 = vadd.f32 %v685_v46, %v449_v53  ;;  %v448_v60 = vld [vmem:[#allocation2 + $0x18] sm:$0xff] }
  0xfc   : > { %v452_v61 = vld [vmem:[#allocation2 + $0x38] sm:$0xff]  ;;  %v494_v0 = vmax.f32 %v486_v56, 0.0  ;;  %v484_v2 = vadd.f32 %v656_v48, %v469_v58  ;;  %v472_v4 = vadd.f32 %v682_v54, %v448_v60 }
  0xfd   : > { %v498_v1 = vmax.f32 %v490_v57, 0.0  ;;  %v488_v3 = vadd.f32 %v656_v48, %v473_v59  ;;  %v476_v5 = vadd.f32 %v690_v55, %v452_v61  ;;  %v446_v6 = vld [vmem:[#allocation2 + $0x8] sm:$0xff] }
  0xfe   : > { %v450_v7 = vld [vmem:[#allocation2 + $0x28] sm:$0xff]  ;;  %v669_v8 = vpack.c.bf16 %v494_v0, %v494_v0  ;;  %v492_v10 = vmax.f32 %v484_v2, 0.0  ;;  %v487_v12 = vadd.f32 %v656_v48, %v472_v4  ;;  %v470_v14 = vadd.f32 %v678_v62, %v446_v6 }
  0xff   : > { %v673_v9 = vpack.c.bf16 %v498_v1, %v498_v1  ;;  %v496_v11 = vmax.f32 %v488_v3, 0.0  ;;  %v491_v13 = vadd.f32 %v656_v48, %v476_v5  ;;  %v474_v15 = vadd.f32 %v686_v63, %v450_v7 }
 0x100   : > { %535 = vst.msk [vmem:[%s910_s26 + $0x8] sm:$0xf] %vm532_vm1, %v669_v8  ;;  %v667_v16 = vpack.c.bf16 %v492_v10, %v492_v10  ;;  %v495_v18 = vmax.f32 %v487_v12, 0.0  ;;  %v485_v20 = vadd.f32 %v656_v48, %v470_v14 }
 0x101   : > { %539 = vst.msk [vmem:[%s910_s26 + $0x18] sm:$0xf] %vm532_vm1, %v673_v9  ;;  %v671_v17 = vpack.c.bf16 %v496_v11, %v496_v11  ;;  %v499_v19 = vmax.f32 %v491_v13, 0.0  ;;  %v489_v21 = vadd.f32 %v656_v48, %v474_v15 }
 0x102   : > { %533 = vst.msk [vmem:[%s910_s26] sm:$0xf] %vm532_vm1, %v667_v16  ;;  %v670_v22 = vpack.c.bf16 %v495_v18, %v495_v18  ;;  %v493_v24 = vmax.f32 %v485_v20, 0.0 }
 0x103   : > { %537 = vst.msk [vmem:[%s910_s26 + $0x10] sm:$0xf] %vm532_vm1, %v671_v17  ;;  %v674_v23 = vpack.c.bf16 %v499_v19, %v499_v19  ;;  %v497_v25 = vmax.f32 %v489_v21, 0.0 }
 0x104   : > { %536 = vst.msk [vmem:[%s910_s26 + $0xc] sm:$0xf] %vm532_vm1, %v670_v22  ;;  %v668_v26 = vpack.c.bf16 %v493_v24, %v493_v24 }
 0x105   : > { %540 = vst.msk [vmem:[%s910_s26 + $0x1c] sm:$0xf] %vm532_vm1, %v674_v23  ;;  %v672_v27 = vpack.c.bf16 %v497_v25, %v497_v25 }
 0x106   : > { %534 = vst.msk [vmem:[%s910_s26 + $0x4] sm:$0xf] %vm532_vm1, %v668_v26 }
 0x107   : > { %538 = vst.msk [vmem:[%s910_s26 + $0x14] sm:$0xf] %vm532_vm1, %v672_v27 }
 0x108 PF: > { %s14_s17 = sadd.s32 1, %s801_s17   ;;  %s942_s15 = smov %s797_s16 }
 0x109   : > { %p11_p6 = scmp.ge.s32.totalorder %s14_s17, 4   ;;  %s943_s16 = smov %s945_s18 }
 0x10b   :  { %13 = sbr.rel (!%p11_p6) target bundleno = 2 (0x2), region = 80 }

</bundles_post_ra>
